<compile_context>
chip_gen: v7x
topology: tpu7x:2x2x1
jax: 0.10.0
libtpu: 0.0.40
codegen_flags: <defaults>
</compile_context>

<pallas_src>
import functools

import jax
import jax.numpy as jnp
from jax.experimental import pallas as pl
from jax.experimental.pallas import tpu as pltpu

EPS = 1e-5
NCORES = 2  # leading "parallel" axis of pass 2 -> shards across v7x's 2 TCs; on
            # single-TC v5e/v6e it is just a cheap outer loop of length 2.


def _round_up(v, m):
    return ((v + m - 1) // m) * m


def _vmem_limit_bytes():
    """Per-generation scoped-VMEM budget (v5e/v6e ~96 MiB, v7x ~48 MiB)."""
    try:
        cap = int(pltpu.get_tpu_info().vmem_capacity_bytes)
    except Exception:
        cap = 128 * 1024 * 1024
    return max(32 * 1024 * 1024, min(int(cap * 3 // 4), 112 * 1024 * 1024))


def _single_buffered(block_shape, index_map):
    """BlockSpec with 1-deep pipelining for (mostly) grid-invariant operands.

    Weights/biases keep the same block index across the whole N axis, so default 2-deep
    pipelining only doubles their VMEM footprint for no DMA benefit.
    """
    try:
        return pl.BlockSpec(block_shape, index_map, pipeline_mode=pl.Buffered(1))
    except Exception:  # older jax without pipeline_mode / Buffered: default buffering
        return pl.BlockSpec(block_shape, index_map)


def _col_tile(rows, cols, bytes_per_el, budget):
    """Largest multiple-of-128 tile of `cols` that divides it and fits `budget` bytes."""
    if rows * cols * bytes_per_el <= budget:
        return cols
    tile = max(128, (budget // (rows * bytes_per_el)) // 128 * 128)
    tile = min(tile, cols)
    while cols % tile:
        tile -= 128
    return max(tile, 128)


def _finalize_stats(sum_, sq_, n):
    """Combine raw (per-core) partial sums -> (mean, rstd).  Cheap XLA ops on (hp,)."""
    axes = tuple(range(sum_.ndim - 1))
    s = jnp.sum(sum_, axis=axes)
    q = jnp.sum(sq_, axis=axes)
    mu = s / n
    # TODO(synk): E[x^2]-mu^2 in f32 can cancel for large-mean features (post-ReLU BN2);
    # switch to shifted / two-pass accumulation if N or activation scale grows.
    var = jnp.maximum(q / n - mu * mu, 0.0)
    return mu, jax.lax.rsqrt(var + EPS)


# ---------------------------------------------------------------------------
# Pass 1: raw per-feature sum / sum-of-squares of x (finalized in the wrapper).
# Purely HBM-bound -> gets its own, larger N tile than the matmul passes.
# ---------------------------------------------------------------------------
def _bn1_stats_kernel(x_ref, sum_ref, sq_ref):
    i = pl.program_id(0)

    @pl.when(i == 0)
    def _init():
        sum_ref[...] = jnp.zeros_like(sum_ref)
        sq_ref[...] = jnp.zeros_like(sq_ref)

    x = x_ref[...].astype(jnp.float32)
    sum_ref[...] += jnp.sum(x, axis=0, keepdims=True)
    sq_ref[...] += jnp.sum(x * x, axis=0, keepdims=True)


# ---------------------------------------------------------------------------
# Pass 2: x @ w1'' + b1'' -> ReLU -> h  (BN1 stats + affine pre-folded into w1''/b1''),
# stream h and accumulate per-core BN2 sum / sumsq partials.
# Grid = (core, out-feature tile, N tile); the N (reduction) axis is innermost.
# ---------------------------------------------------------------------------
def _mid_kernel(x_ref, w1_ref, b1_ref, h_ref, sum2_ref, sq2_ref, *,
                block_n, n_valid, mask_rows, mm_dtype, nt_per_core):
    i = pl.program_id(2)

    @pl.when(i == 0)
    def _init():
        sum2_ref[...] = jnp.zeros_like(sum2_ref)
        sq2_ref[...] = jnp.zeros_like(sq2_ref)

    h = jnp.dot(x_ref[...].astype(mm_dtype), w1_ref[...],
                preferred_element_type=jnp.float32)
    h = jnp.maximum(h + b1_ref[...], 0.0)

    h_q = h.astype(h_ref.dtype)
    h_ref[...] = h_q

    # BN2 statistics from the values actually stored (self-consistent with pass 3).
    h32 = h_q.astype(jnp.float32)
    if mask_rows:  # static: only emitted when the batch was padded
        c = pl.program_id(0)
        row0 = (c * nt_per_core + i) * block_n
        rows = row0 + jax.lax.broadcasted_iota(jnp.int32, h32.shape, 0)
        h32 = jnp.where(rows < n_valid, h32, 0.0)
    sum2_ref[...] += jnp.sum(h32, axis=0).reshape(1, 1, -1)
    sq2_ref[...] += jnp.sum(h32 * h32, axis=0).reshape(1, 1, -1)


# ---------------------------------------------------------------------------
# Pass 3: h @ w2'' + b2''  (BN2 pre-folded).  Fully parallel over both grid axes.
# ---------------------------------------------------------------------------
def _out_kernel(h_ref, w2_ref, b2_ref, o_ref, *, mm_dtype):
    o_ref[...] = (jnp.dot(h_ref[...].astype(mm_dtype), w2_ref[...],
                          preferred_element_type=jnp.float32)
                  + b2_ref[...]).astype(o_ref.dtype)


def mlp_layer(x, params, *, block_n=512, mm_dtype=jnp.bfloat16):
    """x: (N, hidden) float32.  params: dict of BN / Linear parameters (PyTorch layout)."""
    n, hidden = x.shape
    hidden_out = params["w2"].shape[0]
    f32 = jnp.float32
    mm_bytes = jnp.dtype(mm_dtype).itemsize
    vmem_limit = _vmem_limit_bytes()

    # Lane-dense feature / output dims.
    hp = _round_up(hidden, 128)
    hop = _round_up(hidden_out, 128)

    # N tiling for the matmul passes; pad N so each of the NCORES shards of pass 2
    # handles the same number of tiles.  Row-tile multiple matches the packed dtype.
    min_rows = 8 if mm_bytes >= 4 else (16 if mm_bytes == 2 else 32)
    block_n = max(min_rows, (min(block_n, _round_up(n, min_rows)) // min_rows) * min_rows)
    n_pad = _round_up(n, NCORES * block_n)
    nt = n_pad // block_n
    nt_per_core = nt // NCORES

    # Pass 1 tile: HBM-bound and needs almost no VMEM -> use the largest divisor of n_pad.
    block_n1 = next(c for c in (1024, 512, 256, 128, 64, 32, 16, 8)
                    if c <= n_pad and n_pad % c == 0)
    nt1 = n_pad // block_n1

    # Output-feature tiles for the weights (single-buffered slabs fit the VMEM budget).
    w_budget = vmem_limit // 3
    bf1 = _col_tile(hp, hp, mm_bytes, w_budget)
    jt1 = hp // bf1
    bf2 = _col_tile(hp, hop, mm_bytes, w_budget)
    jt2 = hop // bf2

    # Fold the BN affine (gamma/beta) into the linears; the BN batch statistics get
    # folded in after passes 1 / 2, so the kernels run plain  act @ W + b  on the MXU.
    w1f = params["bn1_gamma"][:, None].astype(f32) * params["w1"].T.astype(f32)
    b1f = params["bn1_beta"].astype(f32) @ params["w1"].T.astype(f32) + params["b1"].astype(f32)
    w2f = params["bn2_gamma"][:, None].astype(f32) * params["w2"].T.astype(f32)
    b2f = params["bn2_beta"].astype(f32) @ params["w2"].T.astype(f32) + params["b2"].astype(f32)

    # Pad everything to (8,128)-friendly shapes (padded rows/cols are exactly zero).
    xp = jnp.pad(x.astype(f32), ((0, n_pad - n), (0, hp - hidden)))
    w1fp = jnp.pad(w1f, ((0, hp - hidden), (0, hp - hidden)))
    b1fp = jnp.pad(b1f, (0, hp - hidden))
    w2fp = jnp.pad(w2f, ((0, hp - hidden), (0, hop - hidden_out)))
    b2fp = jnp.pad(b2f, (0, hop - hidden_out))

    cp_p1 = pltpu.CompilerParams(dimension_semantics=("arbitrary",),
                                 vmem_limit_bytes=vmem_limit)
    cp_p2 = pltpu.CompilerParams(
        dimension_semantics=("parallel", "arbitrary", "arbitrary"),
        vmem_limit_bytes=vmem_limit)
    cp_p3 = pltpu.CompilerParams(dimension_semantics=("parallel", "parallel"),
                                 vmem_limit_bytes=vmem_limit)

    # ---- pass 1: raw BN1 sums over the batch --------------------------------
    s1, q1 = pl.pallas_call(
        _bn1_stats_kernel,
        out_shape=(jax.ShapeDtypeStruct((1, hp), f32),
                   jax.ShapeDtypeStruct((1, hp), f32)),
        grid_spec=pltpu.PrefetchScalarGridSpec(
            num_scalar_prefetch=0, grid=(nt1,),
            in_specs=[pl.BlockSpec((block_n1, hp), lambda i: (i, 0))],
            out_specs=[pl.BlockSpec((1, hp), lambda i: (0, 0)),
                       pl.BlockSpec((1, hp), lambda i: (0, 0))]),
        compiler_params=cp_p1,
        cost_estimate=pl.CostEstimate(flops=int(3 * n_pad * hp), transcendentals=0,
                                      bytes_accessed=int(4 * n_pad * hp + 8 * hp)),
    )(xp)
    mu1, rs1 = _finalize_stats(s1, q1, n)

    # Fold BN1 batch stats into Linear1:  BN1(x) @ W1^T + b1  ==  x @ w1'' + b1''.
    w1pp = (rs1[:, None] * w1fp).astype(mm_dtype)
    b1pp = (b1fp - (mu1 * rs1) @ w1fp).reshape(1, hp)

    # ---- pass 2: Linear1 + ReLU, stream h, per-core BN2 partial sums --------
    h, s2, q2 = pl.pallas_call(
        functools.partial(_mid_kernel, block_n=block_n, n_valid=n,
                          mask_rows=(n_pad > n), mm_dtype=mm_dtype,
                          nt_per_core=nt_per_core),
        out_shape=(jax.ShapeDtypeStruct((n_pad, hp), mm_dtype),
                   jax.ShapeDtypeStruct((NCORES, 1, hp), f32),
                   jax.ShapeDtypeStruct((NCORES, 1, hp), f32)),
        grid_spec=pltpu.PrefetchScalarGridSpec(
            num_scalar_prefetch=0, grid=(NCORES, jt1, nt_per_core),
            in_specs=[
                pl.BlockSpec((block_n, hp), lambda c, j, i: (c * nt_per_core + i, 0)),
                _single_buffered((hp, bf1), lambda c, j, i: (0, j)),
                _single_buffered((1, bf1), lambda c, j, i: (0, j)),
            ],
            out_specs=[
                pl.BlockSpec((block_n, bf1), lambda c, j, i: (c * nt_per_core + i, j)),
                pl.BlockSpec((1, 1, bf1), lambda c, j, i: (c, 0, j)),
                pl.BlockSpec((1, 1, bf1), lambda c, j, i: (c, 0, j)),
            ]),
        compiler_params=cp_p2,
        cost_estimate=pl.CostEstimate(
            flops=int(2 * n_pad * hp * hp + 6 * n_pad * hp), transcendentals=0,
            bytes_accessed=int(4 * n_pad * hp * jt1 + mm_bytes * n_pad * hp
                               + mm_bytes * hp * hp * NCORES + 16 * hp)),
    )(xp, w1pp, b1pp)
    mu2, rs2 = _finalize_stats(s2, q2, n)

    # Fold BN2 batch stats into Linear2.
    w2pp = (rs2[:, None] * w2fp).astype(mm_dtype)
    b2pp = (b2fp - (mu2 * rs2) @ w2fp).reshape(1, hop)

    # ---- pass 3: Linear2 -----------------------------------------------------
    out = pl.pallas_call(
        functools.partial(_out_kernel, mm_dtype=mm_dtype),
        out_shape=jax.ShapeDtypeStruct((n_pad, hop), f32),
        grid_spec=pltpu.PrefetchScalarGridSpec(
            num_scalar_prefetch=0, grid=(jt2, nt),
            in_specs=[
                pl.BlockSpec((block_n, hp), lambda j, i: (i, 0)),
                _single_buffered((hp, bf2), lambda j, i: (0, j)),
                _single_buffered((1, bf2), lambda j, i: (0, j)),
            ],
            out_specs=pl.BlockSpec((block_n, bf2), lambda j, i: (i, j))),
        compiler_params=cp_p3,
        cost_estimate=pl.CostEstimate(
            flops=int(2 * n_pad * hp * hop + 2 * n_pad * hop), transcendentals=0,
            bytes_accessed=int(mm_bytes * n_pad * hp * jt2 + mm_bytes * hp * hop
                               + 4 * n_pad * hop)),
    )(h, w2pp, b2pp)

    return out[:n, :hidden_out]


def mlp_layer_ref(x, params):
    """Pure-JAX f32 reference matching the PyTorch forward (training-mode BN)."""
    def bn(v, gamma, beta):
        mu = jnp.mean(v, axis=0, keepdims=True)
        var = jnp.mean((v - mu) ** 2, axis=0, keepdims=True)
        return (v - mu) / jnp.sqrt(var + EPS) * gamma + beta

    h = bn(x, params["bn1_gamma"], params["bn1_beta"])
    h = h @ params["w1"].T + params["b1"]
    h = jnp.maximum(h, 0.0)
    h = bn(h, params["bn2_gamma"], params["bn2_beta"])
    return h @ params["w2"].T + params["b2"]


def init_params(key, hidden, hidden_out):
    ks = jax.random.split(key, 6)
    return {
        "bn1_gamma": 1.0 + 0.1 * jax.random.normal(ks[0], (hidden,), jnp.float32),
        "bn1_beta": 0.1 * jax.random.normal(ks[1], (hidden,), jnp.float32),
        "bn2_gamma": 1.0 + 0.1 * jax.random.normal(ks[2], (hidden,), jnp.float32),
        "bn2_beta": 0.1 * jax.random.normal(ks[3], (hidden,), jnp.float32),
        # PyTorch Linear weight shape: (out_features, in_features).
        "w1": jax.random.normal(ks[4], (hidden, hidden), jnp.float32) / jnp.sqrt(hidden),
        "b1": jnp.zeros((hidden,), jnp.float32),
        "w2": jax.random.normal(ks[5], (hidden_out, hidden), jnp.float32) / jnp.sqrt(hidden),
        "b2": jnp.zeros((hidden_out,), jnp.float32),
    }


if __name__ == "__main__":
    batch, hidden, hidden_out = 30, 32, 16   # non-multiple-of-8 batch exercises padding/masking

    key = jax.random.PRNGKey(0)
    k_x, k_p = jax.random.split(key)
    x = jax.random.normal(k_x, (batch, hidden), jnp.float32)
    params = init_params(k_p, hidden, hidden_out)

    ref = mlp_layer_ref(x, params)

    # f32 MXU operands: tight check of tiling / two-phase-BN / stat-folding logic.
    out_f32 = jax.block_until_ready(mlp_layer(x, params, block_n=8, mm_dtype=jnp.float32))
    assert out_f32.shape == (batch, hidden_out)
    assert jnp.allclose(out_f32, ref, atol=1e-4, rtol=1e-4), "f32 kernel mismatch vs reference"

    # bf16 MXU operands with f32 accumulation (production path): looser tolerance.
    out_bf16 = jax.block_until_ready(mlp_layer(x, params))
    assert out_bf16.shape == (batch, hidden_out)
    assert jnp.allclose(out_bf16, ref, atol=1e-1, rtol=1e-1), "bf16 kernel mismatch vs reference"

    print("KERNEL_OK")
</pallas_src>

<mosaic_0001>
module attributes {stable_mosaic.version = 11 : i64} {
  func.func @_bn1_stats_kernel(%arg0: i32, %arg1: memref<32x128xf32, #tpu.memory_space<vmem>>, %arg2: memref<1x128xf32, #tpu.memory_space<vmem>>, %arg3: memref<1x128xf32, #tpu.memory_space<vmem>>) attributes {dimension_semantics = [#tpu.dimension_semantics<arbitrary>], iteration_bounds = array<i64: 1>, scalar_prefetch = 0 : i64, scratch_operands = 0 : i64, tpu.core_type = #tpu.core_type<tc>, window_params = [{transform_indices = @transform_0, window_bounds = array<i64: 32, 128>}, {pipeline_mode = #tpu.pipeline_mode<synchronous>, transform_indices = @transform_1, window_bounds = array<i64: 1, 128>}, {pipeline_mode = #tpu.pipeline_mode<synchronous>, transform_indices = @transform_2, window_bounds = array<i64: 1, 128>}]} {
    %c0_i32 = arith.constant 0 : i32
    %0 = arith.cmpi eq, %arg0, %c0_i32 : i32
    %1 = arith.extui %0 : i1 to i32
    %c0_i32_0 = arith.constant 0 : i32
    %2 = arith.cmpi ne, %1, %c0_i32_0 : i32
    scf.if %2 {
      %cst_11 = arith.constant 0.000000e+00 : f32
      %15 = vector.broadcast %cst_11 : f32 to vector<1x128xf32>
      %c0_12 = arith.constant 0 : index
      %c0_13 = arith.constant 0 : index
      %16 = vector.load %arg2[%c0_12, %c0_13] : memref<1x128xf32, #tpu.memory_space<vmem>>, vector<1x128xf32>
      tpu.vector_store %arg2[%c0_12, %c0_13], %15 {strides = array<i32>} : memref<1x128xf32, #tpu.memory_space<vmem>>, vector<1x128xf32>,
      %cst_14 = arith.constant 0.000000e+00 : f32
      %17 = vector.broadcast %cst_14 : f32 to vector<1x128xf32>
      %c0_15 = arith.constant 0 : index
      %c0_16 = arith.constant 0 : index
      %18 = vector.load %arg3[%c0_15, %c0_16] : memref<1x128xf32, #tpu.memory_space<vmem>>, vector<1x128xf32>
      tpu.vector_store %arg3[%c0_15, %c0_16], %17 {strides = array<i32>} : memref<1x128xf32, #tpu.memory_space<vmem>>, vector<1x128xf32>,
    } else {
    }
    %c0 = arith.constant 0 : index
    %c0_1 = arith.constant 0 : index
    %3 = vector.load %arg1[%c0, %c0_1] : memref<32x128xf32, #tpu.memory_space<vmem>>, vector<32x128xf32>
    %c0_2 = arith.constant 0 : index
    %c0_3 = arith.constant 0 : index
    %4 = vector.load %arg2[%c0_2, %c0_3] : memref<1x128xf32, #tpu.memory_space<vmem>>, vector<1x128xf32>
    %cst = arith.constant dense<0.000000e+00> : vector<128xf32>
    %5 = vector.multi_reduction <add>, %3, %cst [0] : vector<32x128xf32> to vector<128xf32>
    %6 = vector.shape_cast %5 : vector<128xf32> to vector<1x128xf32>
    %7 = arith.addf %4, %6 : vector<1x128xf32>
    %c0_4 = arith.constant 0 : index
    %c0_5 = arith.constant 0 : index
    %8 = vector.load %arg2[%c0_4, %c0_5] : memref<1x128xf32, #tpu.memory_space<vmem>>, vector<1x128xf32>
    tpu.vector_store %arg2[%c0_4, %c0_5], %7 {strides = array<i32>} : memref<1x128xf32, #tpu.memory_space<vmem>>, vector<1x128xf32>,
    %c0_6 = arith.constant 0 : index
    %c0_7 = arith.constant 0 : index
    %9 = vector.load %arg3[%c0_6, %c0_7] : memref<1x128xf32, #tpu.memory_space<vmem>>, vector<1x128xf32>
    %10 = arith.mulf %3, %3 : vector<32x128xf32>
    %cst_8 = arith.constant dense<0.000000e+00> : vector<128xf32>
    %11 = vector.multi_reduction <add>, %10, %cst_8 [0] : vector<32x128xf32> to vector<128xf32>
    %12 = vector.shape_cast %11 : vector<128xf32> to vector<1x128xf32>
    %13 = arith.addf %9, %12 : vector<1x128xf32>
    %c0_9 = arith.constant 0 : index
    %c0_10 = arith.constant 0 : index
    %14 = vector.load %arg3[%c0_9, %c0_10] : memref<1x128xf32, #tpu.memory_space<vmem>>, vector<1x128xf32>
    tpu.vector_store %arg3[%c0_9, %c0_10], %13 {strides = array<i32>} : memref<1x128xf32, #tpu.memory_space<vmem>>, vector<1x128xf32>,
    return
  }
  func.func @transform_0(%arg0: i32) -> (i32, i32) {
    %c0_i32 = arith.constant 0 : i32
    %c0_i32_0 = arith.constant 0 : i32
    return %arg0, %c0_i32 : i32, i32
  }
  func.func @transform_1(%arg0: i32) -> (i32, i32) {
    %c0_i32 = arith.constant 0 : i32
    %c0_i32_0 = arith.constant 0 : i32
    %c0_i32_1 = arith.constant 0 : i32
    return %c0_i32, %c0_i32_0 : i32, i32
  }
  func.func @transform_2(%arg0: i32) -> (i32, i32) {
    %c0_i32 = arith.constant 0 : i32
    %c0_i32_0 = arith.constant 0 : i32
    %c0_i32_1 = arith.constant 0 : i32
    return %c0_i32, %c0_i32_0 : i32, i32
  }
}

</mosaic_0001>

<bundles_post_ra>
// kernel: tpu_custom_call.1
= control target key start
LH: loop header
LB: loop body
LE: loop exit
PB: predicated region body
PF: predicated region fallthrough
CT: control target
= control target key end

     0   :  { %8 = vsyncpa [#allocation3], 0  ;;  %s236_s0 = inlined_call_operand.hbm [shape: f32[32,128], index: 0, kind: input, shape index: {}]   ;;  %s237_s1 = inlined_call_operand.hbm [shape: f32[1,128], index: 1, kind: output, shape index: {0}]   ;;  %s238_s2 = inlined_call_operand.hbm [shape: f32[1,128], index: 2, kind: output, shape index: {1}]  }
   0x1   :  { %9 = vsyncpa [#allocation4], 0 }
   0x2   :  { %10 = vsyncpa [#allocation7], 0  ;;  %s171_s9 = smov [#allocation2]   ;;  %s99_s13 = scalar_lea.hbm %s236_s0, 512 }
   0x3   :  { %s16_s10 = sshll.u32 %s171_s9, 4  ;;  %p100_p0 = scmp.ne.s32.totalorder %s236_s0, %s99_s13  ;;  %s17_s10 = int_to_ptr.vmem [resolvable:$true] %s16_s10 }
   0x4   :  { %p103_p1 = scmp.lt.u32.totalorder %s99_s13, %s236_s0 }
   0x6   :  { %p105_p2 = pnand %p103_p1, %p100_p0 }
   0x8   :  { %108 = shalt.err (!%p105_p2)
}
   0x9   :  { %s109_s18 = scalar_lea.vmem %s17_s10, 512  ;;  %p114_p4 = scmp.lt.s32.totalorder %s17_s10, %s17_s10 }
   0xa   :  { %p110_p3 = scmp.ne.s32.totalorder %s17_s10, %s109_s18  ;;  %p115_p5 = scmp.lt.s32.totalorder %s109_s18, %s109_s18 }
   0xc   :  { %p116_p6 = por %p115_p5, %p114_p4 }
   0xe   :  { %p117_p7 = pnand %p116_p6, %p110_p3 }
  0x10   :  { %120 = shalt.err (!%p117_p7)
}
  0x11   :  { %s172_s19 = smov 128   ;;  %s173_s20 = smov 8  }
  0x12   :  { %22 = dma.hbm_to_vmem [thread:$0]  %s236_s0, 512, %s17_s10, [#allocation3], %s172_s19, %s172_s19, %s173_s20  }
  0x13   :  { %165 = dma.done.wait [#allocation3], 512  }
  0x14   :  { %166 = vsyncadd [#allocation3], 4294966784  ;;  %v174_v0 = vmov 0.0   ;;  %v32_v1 = vld [vmem:[#allocation2] sm:$0xff]  ;;  %v33_v2 = vld [vmem:[#allocation2 + $0x8] sm:$0xff]  ;;  %s175_s0 = smov [#allocation5]  }
  0x15   :  { %30 = vst [vmem:[#allocation5] sm:$0x1] %v174_v0  ;;  %31 = vst [vmem:[#allocation6] sm:$0x1] %v174_v0  ;;  %v34_v3 = vld [vmem:[#allocation2 + $0x10] sm:$0xff]  ;;  %v35_v4 = vld [vmem:[#allocation2 + $0x18] sm:$0xff]  ;;  %v37_v5 = vadd.f32 %v33_v2, %v32_v1  ;;  %v49_v6 = vmul.f32 %v32_v1, %v32_v1  ;;  %v50_v7 = vmul.f32 %v33_v2, %v33_v2 }
  0x16   :  { %v51_v8 = vmul.f32 %v34_v3, %v34_v3  ;;  %v52_v10 = vmul.f32 %v35_v4, %v35_v4  ;;  %s70_s23 = sshll.u32 %s175_s0, 4  ;;  %s176_s24 = smov [#allocation6]   ;;  %s71_s23 = int_to_ptr.vmem [resolvable:$true] %s70_s23 }
  0x17   :  { %v38_v9 = vadd.f32 %v37_v5, %v34_v3  ;;  %v53_v11 = vadd.f32 %v50_v7, %v49_v6  ;;  %s80_s25 = sshll.u32 %s176_s24, 4  ;;  %s121_s26 = scalar_lea.vmem %s71_s23, 16  ;;  %s204_s25 = int_to_ptr.vmem [resolvable:$true] %s80_s25 }
  0x18   :  { %p122_p8 = scmp.ne.s32.totalorder %s71_s23, %s121_s26  ;;  %s125_s27 = scalar_lea.vmem %s71_s23, 32 }
  0x19   :  { %v39_v12 = vadd.f32 %v38_v9, %v35_v4  ;;  %v54_v13 = vadd.f32 %v53_v11, %v51_v8  ;;  %p126_p9 = scmp.lt.s32.totalorder %s71_s23, %s71_s23  ;;  %p127_p10 = scmp.lt.s32.totalorder %s125_s27, %s121_s26 }
  0x1b   :  { %v40_v14 = vrot.slane %v39_v12, 4  ;;  %v55_v15 = vadd.f32 %v54_v13, %v52_v10  ;;  %p128_p11 = por %p127_p10, %p126_p9 }
  0x1c   :  { %v36_v24 = vld [vmem:[#allocation5] sm:$0x1]  ;;  %v48_v27 = vld [vmem:[#allocation6] sm:$0x1] }
  0x1d   :  { %v41_v16 = vadd.f32 %v40_v14, %v39_v12  ;;  %v56_v17 = vrot.slane %v55_v15, 4  ;;  %p129_p12 = pnand %p128_p11, %p122_p8 }
  0x1f   :  { %v42_v18 = vrot.slane %v41_v16, 2  ;;  %v57_v19 = vadd.f32 %v56_v17, %v55_v15 }
  0x21   :  { %v43_v20 = vadd.f32 %v42_v18, %v41_v16  ;;  %v58_v21 = vrot.slane %v57_v19, 2 }
  0x23   :  { %v44_v22 = vrot.slane %v43_v20, 1  ;;  %v59_v23 = vadd.f32 %v58_v21, %v57_v19 }
  0x25   :  { %v45_v25 = vadd.f32 %v44_v22, %v43_v20  ;;  %v60_v26 = vrot.slane %v59_v23, 1 }
  0x27   :  { %v46_v28 = vadd.f32 %v45_v25, %v36_v24  ;;  %v61_v29 = vadd.f32 %v60_v26, %v59_v23 }
  0x29   :  { %47 = vst [vmem:[#allocation5] sm:$0x1] %v46_v28  ;;  %v62_v30 = vadd.f32 %v61_v29, %v48_v27 }
  0x2a   :  { %132 = shalt.err (!%p129_p12)
}
  0x2b   :  { %s133_s30 = scalar_lea.hbm %s237_s1, 16 }
  0x2c   :  { %p134_p13 = scmp.ne.s32.totalorder %s237_s1, %s133_s30  ;;  %p137_p0 = scmp.lt.u32.totalorder %s133_s30, %s237_s1 }
  0x2e   :  { %p139_p1 = pnand %p137_p0, %p134_p13 }
  0x30   :  { %142 = shalt.err (!%p139_p1)
}
  0x31   :  { %73 = dma.vmem_to_hbm [thread:$0]  %s71_s23, 16, %s237_s1, [#allocation4]   ;;  %63 = vst [vmem:[#allocation6] sm:$0x1] %v62_v30 }
  0x32   :  { %s143_s9 = scalar_lea.vmem %s204_s25, 16  ;;  %s147_s10 = scalar_lea.vmem %s204_s25, 32 }
  0x33   :  { %p144_p2 = scmp.ne.s32.totalorder %s204_s25, %s143_s9  ;;  %p148_p3 = scmp.lt.s32.totalorder %s204_s25, %s204_s25 }
  0x34   :  { %p149_p4 = scmp.lt.s32.totalorder %s147_s10, %s143_s9 }
  0x36   :  { %p150_p5 = por %p149_p4, %p148_p3 }
  0x38   :  { %p151_p6 = pnand %p150_p5, %p144_p2 }
  0x3a   :  { %154 = shalt.err (!%p151_p6)
}
  0x3b   :  { %s155_s13 = scalar_lea.hbm %s238_s2, 16 }
  0x3c   :  { %p156_p7 = scmp.ne.s32.totalorder %s238_s2, %s155_s13  ;;  %p159_p8 = scmp.lt.u32.totalorder %s155_s13, %s238_s2 }
  0x3e   :  { %p161_p9 = pnand %p159_p8, %p156_p7 }
  0x40   :  { %164 = shalt.err (!%p161_p9)
}
  0x41   :  { %83 = dma.vmem_to_hbm [thread:$0]  %s204_s25, 16, %s238_s2, [#allocation7]  }
  0x42   :  { %167 = dma.done.wait [#allocation4], 16  }
  0x43   :  { %168 = vsyncadd [#allocation4], 4294967280 }
  0x44   :  { %169 = dma.done.wait [#allocation7], 16  }
  0x45   :  { %170 = vsyncadd [#allocation7], 4294967280 }
  0x46   :  { %90 = vsyncpa [#allocation3], 1 }
  0x47   :  { %91 = vsyncpa [#allocation4], 1 }
  0x48   :  { %92 = vsyncpa [#allocation7], 1 }

</bundles_post_ra>
